<compile_context>
chip_gen: v6e
topology: v6e:2x2x1
jax: 0.10.0
libtpu: 0.0.40
codegen_flags: <defaults>
</compile_context>

<pallas_src>
import jax
import jax.numpy as jnp
from jax.experimental import pallas as pl
from jax.experimental.pallas import tpu as pltpu

_BN_EPS = 1e-5


def _round_up(a, b):
    return (a + b - 1) // b * b


# ------------------------------ Pallas kernels ------------------------------

def _kernel_res(lhs_ref, wg_ref, wr_ref, shifts_ref, o_ref):
    # lhs_ref:    (TM, CV)    bf16   rows = (n,t), cols = (c,w)
    # wg_ref:     (CV, TN)    bf16   folded GCN operator (column tile)
    # wr_ref:     (CV, TN)    bf16   folded residual operator (column tile)
    # shifts_ref: (2, TN)     f32    row 0 = GCN BN shift, row 1 = residual shift
    # o_ref:      (TM, TN)    bf16
    g = jnp.dot(lhs_ref[...], wg_ref[...], preferred_element_type=jnp.float32)
    r = jnp.dot(lhs_ref[...], wr_ref[...], preferred_element_type=jnp.float32)
    g = jnp.maximum(g + shifts_ref[0:1, :], 0.0)     # conv+BN+ReLU (GCN branch)
    r = r + shifts_ref[1:2, :]                       # residual conv + BN
    o_ref[...] = (g + r).astype(o_ref.dtype)


def _kernel_identity(lhs_ref, res_ref, wg_ref, shift_ref, o_ref):
    # Identity residual (C_in == C_out): residual is x itself; res_ref is the
    # matching (TM, TN) column tile of the (padded) lhs -> plain VPU add.
    g = jnp.dot(lhs_ref[...], wg_ref[...], preferred_element_type=jnp.float32)
    g = jnp.maximum(g + shift_ref[...], 0.0)
    o_ref[...] = (g + res_ref[...].astype(jnp.float32)).astype(o_ref.dtype)


# ------------------------------ Wrapper (glue) ------------------------------

def init_params(key, c_in, c_out, num_subset, v):
    """Deterministic synthetic parameters matching the module's shapes."""
    ks = jax.random.split(key, 12)
    p = {
        # nn.init.constant_(graph_attn, 1)
        "graph_attn": jnp.ones((num_subset, v, v), jnp.float32),
        # conv_d[k]: Conv2d(c_in, c_out, 1) -> weight (c_out, c_in), bias (c_out,)
        "w_d": 0.1 * jax.random.normal(ks[0], (num_subset, c_out, c_in), jnp.float32),
        "b_d": 0.1 * jax.random.normal(ks[1], (num_subset, c_out), jnp.float32),
        # BatchNorm2d(c_out) of the GCN branch (eval-mode running stats)
        "bn_g_gamma": 0.5 + jax.random.uniform(ks[2], (c_out,), jnp.float32),
        "bn_g_beta": 0.1 * jax.random.normal(ks[3], (c_out,), jnp.float32),
        "bn_g_mean": 0.1 * jax.random.normal(ks[4], (c_out,), jnp.float32),
        "bn_g_var": 0.5 + jax.random.uniform(ks[5], (c_out,), jnp.float32),
    }
    if c_in != c_out:
        p.update({
            "w_r": 0.1 * jax.random.normal(ks[6], (c_out, c_in), jnp.float32),
            "b_r": 0.1 * jax.random.normal(ks[7], (c_out,), jnp.float32),
            "bn_r_gamma": 0.5 + jax.random.uniform(ks[8], (c_out,), jnp.float32),
            "bn_r_beta": 0.1 * jax.random.normal(ks[9], (c_out,), jnp.float32),
            "bn_r_mean": 0.1 * jax.random.normal(ks[10], (c_out,), jnp.float32),
            "bn_r_var": 0.5 + jax.random.uniform(ks[11], (c_out,), jnp.float32),
        })
    else:
        p["w_r"] = None  # residual_s = identity
    return p


def _vmem_limit_bytes(tm, cv, tn, n_weights, identity):
    """Per-step VMEM estimate (with 2x headroom), clamped to sane bounds."""
    b = 2 * tm * cv * 2                 # lhs (double-buffered, bf16)
    if identity:
        b += 2 * tm * tn * 2            # residual column tile (double-buffered)
    b += n_weights * cv * tn * 2        # single-buffered folded operator(s)
    b += 8 * tn * 4                     # shifts (sublane-padded), single-buffered
    b += 2 * tm * tn * 4                # output tile (double-buffered, worst case f32)
    b += 2 * tm * tn * 4                # f32 epilogue temporaries (g, r)
    return int(min(64 << 20, max(8 << 20, 2 * b)))


def part_agcn_residual(x, A, params, part_mask=None, out_dtype=jnp.bfloat16):
    """Forward of Part_AGCN_Residual. x: (N, C, T, V), A: (K, V, V)."""
    N, C, T, V = x.shape
    C_out = params["w_d"].shape[1]
    CV, OV = C * V, C_out * V

    # Adaptive adjacency: A * learnable attention (and optional part mask).
    A_eff = (A * params["graph_attn"]).astype(jnp.float32)
    if part_mask is not None:
        A_eff = A_eff * part_mask[None]

    # ---- Fold conv biases + eval-mode BatchNorm into the operator / shifts ----
    sg = params["bn_g_gamma"] / jnp.sqrt(params["bn_g_var"] + _BN_EPS)
    shift_g = sg * (params["b_d"].sum(axis=0) - params["bn_g_mean"]) + params["bn_g_beta"]
    # Wg[(c,w),(o,v)] = sum_k sg[o] * W_d[k,o,c] * A_eff[k,w,v]
    w_gcn = jnp.einsum("koc,kwv->cwov", params["w_d"] * sg[None, :, None],
                       A_eff).reshape(CV, OV)
    shift_g_v = jnp.repeat(shift_g, V)  # (OV,) in (o, v) column order

    identity_residual = params.get("w_r", None) is None

    # ---- Tile sizes -----------------------------------------------------------
    M = N * T
    # >=2 row steps whenever M >= 32 (v7x: shard "parallel" axis over 2 TCs);
    # TM is a multiple of 16 (bf16 sublane packing), capped at 512 rows.
    TM = min(512, _round_up(max(1, (M + 1) // 2), 16))
    M_pad = _round_up(M, TM)
    # Output-column tiles: lane-dense (>=128) and bounded so the resident
    # single-buffered weight tile stays small at large C_out.
    TN = min(1024, _round_up(OV, 128))
    OV_pad = _round_up(OV, TN)

    lhs = jnp.transpose(x, (0, 2, 1, 3)).reshape(M, CV)
    if M_pad != M:
        lhs = jnp.pad(lhs, ((0, M_pad - M), (0, 0)))

    def pad_cols(a, width):
        return a if a.shape[-1] == width else jnp.pad(a, ((0, 0), (0, width - a.shape[-1])))

    const = pl.Buffered(1)  # single-buffer operands that are constant over the inner loop
    grid = (OV_pad // TN, M_pad // TM)  # (column tiles, row tiles); rows innermost

    if identity_residual:
        # Pad contraction and output lanes to the same width so the residual
        # tile is simply a column tile of the (padded) lhs — no extra matmul.
        CV_pad = OV_pad
        lhs_b = pad_cols(lhs, CV_pad).astype(jnp.bfloat16)
        w_g = jnp.pad(w_gcn, ((0, CV_pad - CV), (0, OV_pad - OV))).astype(jnp.bfloat16)
        shifts = pad_cols(shift_g_v[None, :], OV_pad).astype(jnp.float32)
        kernel = _kernel_identity
        in_specs = [
            pl.BlockSpec((TM, CV_pad), lambda n, m: (m, 0)),
            pl.BlockSpec((TM, TN), lambda n, m: (m, n)),
            pl.BlockSpec((CV_pad, TN), lambda n, m: (0, n), pipeline_mode=const),
            pl.BlockSpec((1, TN), lambda n, m: (0, n), pipeline_mode=const),
        ]
        args = (lhs_b, lhs_b, w_g, shifts)
        vmem = _vmem_limit_bytes(TM, CV_pad, TN, n_weights=1, identity=True)
    else:
        sr = params["bn_r_gamma"] / jnp.sqrt(params["bn_r_var"] + _BN_EPS)
        shift_r = sr * (params["b_r"] - params["bn_r_mean"]) + params["bn_r_beta"]
        # Wr[(c,w),(o,v)] = sr[o] * W_r[o,c] * I[w,v]
        w_res = jnp.einsum("oc,wv->cwov", params["w_r"] * sr[:, None],
                           jnp.eye(V, dtype=jnp.float32)).reshape(CV, OV)
        lhs_b = lhs.astype(jnp.bfloat16)
        w_g = pad_cols(w_gcn, OV_pad).astype(jnp.bfloat16)
        w_r = pad_cols(w_res, OV_pad).astype(jnp.bfloat16)
        shifts = pad_cols(jnp.stack([shift_g_v, jnp.repeat(shift_r, V)]),
                          OV_pad).astype(jnp.float32)
        kernel = _kernel_res
        in_specs = [
            pl.BlockSpec((TM, CV), lambda n, m: (m, 0)),
            pl.BlockSpec((CV, TN), lambda n, m: (0, n), pipeline_mode=const),
            pl.BlockSpec((CV, TN), lambda n, m: (0, n), pipeline_mode=const),
            pl.BlockSpec((2, TN), lambda n, m: (0, n), pipeline_mode=const),
        ]
        args = (lhs_b, w_g, w_r, shifts)
        vmem = _vmem_limit_bytes(TM, CV, TN, n_weights=2, identity=False)

    out = pl.pallas_call(
        kernel,
        out_shape=jax.ShapeDtypeStruct((M_pad, OV_pad), out_dtype),
        grid=grid,
        in_specs=in_specs,
        out_specs=pl.BlockSpec((TM, TN), lambda n, m: (m, n)),
        compiler_params=pltpu.CompilerParams(
            dimension_semantics=("parallel", "parallel"),
            vmem_limit_bytes=vmem,
        ),
    )(*args)

    out = out[:M, :OV].reshape(N, T, C_out, V).transpose(0, 2, 1, 3)
    return out


# ------------------------- Pure-JAX reference check -------------------------

def _bn_eval(y, gamma, beta, mean, var):
    b = lambda a: a[None, :, None, None]
    return b(gamma) * (y - b(mean)) / jnp.sqrt(b(var) + _BN_EPS) + b(beta)


def reference_forward(x, A, params, part_mask=None):
    K = A.shape[0]
    A_eff = A * params["graph_attn"]
    if part_mask is not None:
        A_eff = A_eff * part_mask[None]
    hidden = None
    for k in range(K):
        xa = jnp.einsum("nctw,wv->nctv", x, A_eff[k], precision="highest")
        z = jnp.einsum("oc,nctv->notv", params["w_d"][k], xa, precision="highest")
        z = z + params["b_d"][k][None, :, None, None]
        hidden = z if hidden is None else hidden + z
    y = jax.nn.relu(_bn_eval(hidden, params["bn_g_gamma"], params["bn_g_beta"],
                             params["bn_g_mean"], params["bn_g_var"]))
    if params["w_r"] is None:
        r = x
    else:
        r = jnp.einsum("oc,nctv->notv", params["w_r"], x, precision="highest")
        r = r + params["b_r"][None, :, None, None]
        r = _bn_eval(r, params["bn_r_gamma"], params["bn_r_beta"],
                     params["bn_r_mean"], params["bn_r_var"])
    return y + r


# ----------------------------------- Main -----------------------------------

if __name__ == "__main__":
    N, C_IN, C_OUT, T, V, K = 2, 4, 8, 8, 16, 3  # small synthetic skeleton graph

    key = jax.random.PRNGKey(0)
    kx, kp, kp2 = jax.random.split(key, 3)
    x = jax.random.normal(kx, (N, C_IN, T, V), jnp.float32)

    # Deterministic 3-subset adjacency (self / forward ring / backward ring).
    eye = jnp.eye(V, dtype=jnp.float32)
    A = jnp.stack([eye, jnp.roll(eye, 1, axis=1), jnp.roll(eye, -1, axis=1)])

    # Case 1: C_in != C_out (conv + BN residual branch).
    params = init_params(kp, C_IN, C_OUT, K, V)
    out = jax.block_until_ready(part_agcn_residual(x, A, params, part_mask=None))
    ref = reference_forward(x, A, params, part_mask=None)
    assert out.shape == (N, C_OUT, T, V), out.shape
    assert jnp.allclose(out.astype(jnp.float32), ref, rtol=2e-2, atol=2e-2), (
        float(jnp.max(jnp.abs(out.astype(jnp.float32) - ref))))

    # Case 2: C_in == C_out (identity residual path).
    params_id = init_params(kp2, C_IN, C_IN, K, V)
    out_id = jax.block_until_ready(part_agcn_residual(x, A, params_id, part_mask=None))
    ref_id = reference_forward(x, A, params_id, part_mask=None)
    assert out_id.shape == (N, C_IN, T, V), out_id.shape
    assert jnp.allclose(out_id.astype(jnp.float32), ref_id, rtol=2e-2, atol=2e-2), (
        float(jnp.max(jnp.abs(out_id.astype(jnp.float32) - ref_id))))

    print("KERNEL_OK")
</pallas_src>

<mosaic_0001>
module attributes {stable_mosaic.version = 11 : i64} {
  func.func @_kernel_res(%arg0: i32, %arg1: i32, %arg2: memref<16x64xbf16, #tpu.memory_space<vmem>>, %arg3: memref<64x128xbf16, #tpu.memory_space<vmem>>, %arg4: memref<64x128xbf16, #tpu.memory_space<vmem>>, %arg5: memref<2x128xf32, #tpu.memory_space<vmem>>, %arg6: memref<16x128xbf16, #tpu.memory_space<vmem>>) attributes {dimension_semantics = [#tpu.dimension_semantics<parallel>, #tpu.dimension_semantics<parallel>], iteration_bounds = array<i64: 1, 1>, scalar_prefetch = 0 : i64, scratch_operands = 0 : i64, tpu.core_type = #tpu.core_type<tc>, window_params = [{transform_indices = @transform_0, window_bounds = array<i64: 16, 64>}, {pipeline_mode = #tpu.pipeline_mode<synchronous>, transform_indices = @transform_1, window_bounds = array<i64: 64, 128>}, {pipeline_mode = #tpu.pipeline_mode<synchronous>, transform_indices = @transform_2, window_bounds = array<i64: 64, 128>}, {pipeline_mode = #tpu.pipeline_mode<synchronous>, transform_indices = @transform_3, window_bounds = array<i64: 2, 128>}, {transform_indices = @transform_4, window_bounds = array<i64: 16, 128>}]} {
    %c0 = arith.constant 0 : index
    %c0_0 = arith.constant 0 : index
    %0 = vector.load %arg2[%c0, %c0_0] : memref<16x64xbf16, #tpu.memory_space<vmem>>, vector<16x64xbf16>
    %c0_1 = arith.constant 0 : index
    %c0_2 = arith.constant 0 : index
    %1 = vector.load %arg3[%c0_1, %c0_2] : memref<64x128xbf16, #tpu.memory_space<vmem>>, vector<64x128xbf16>
    %cst = arith.constant dense<0.000000e+00> : vector<16x128xf32>
    %2 = tpu.matmul %0, %1, %cst {dimension_numbers = #tpu.dot_dimension_numbers<[1], [0], [0], [1], [0, 0, 1, 1], [], []>} : vector<16x64xbf16>, vector<64x128xbf16>, vector<16x128xf32> -> vector<16x128xf32>
    %c0_3 = arith.constant 0 : index
    %c0_4 = arith.constant 0 : index
    %3 = vector.load %arg2[%c0_3, %c0_4] : memref<16x64xbf16, #tpu.memory_space<vmem>>, vector<16x64xbf16>
    %c0_5 = arith.constant 0 : index
    %c0_6 = arith.constant 0 : index
    %4 = vector.load %arg4[%c0_5, %c0_6] : memref<64x128xbf16, #tpu.memory_space<vmem>>, vector<64x128xbf16>
    %cst_7 = arith.constant dense<0.000000e+00> : vector<16x128xf32>
    %5 = tpu.matmul %3, %4, %cst_7 {dimension_numbers = #tpu.dot_dimension_numbers<[1], [0], [0], [1], [0, 0, 1, 1], [], []>} : vector<16x64xbf16>, vector<64x128xbf16>, vector<16x128xf32> -> vector<16x128xf32>
    %c0_8 = arith.constant 0 : index
    %c0_9 = arith.constant 0 : index
    %6 = vector.load %arg5[%c0_8, %c0_9] : memref<2x128xf32, #tpu.memory_space<vmem>>, vector<1x128xf32>
    %7 = vector.broadcast %6 : vector<1x128xf32> to vector<16x128xf32>
    %8 = arith.addf %2, %7 : vector<16x128xf32>
    %cst_10 = arith.constant 0.000000e+00 : f32
    %9 = vector.broadcast %cst_10 : f32 to vector<16x128xf32>
    %10 = arith.maximumf %8, %9 : vector<16x128xf32>
    %c1 = arith.constant 1 : index
    %c0_11 = arith.constant 0 : index
    %11 = vector.load %arg5[%c1, %c0_11] : memref<2x128xf32, #tpu.memory_space<vmem>>, vector<1x128xf32>
    %12 = vector.broadcast %11 : vector<1x128xf32> to vector<16x128xf32>
    %13 = arith.addf %5, %12 : vector<16x128xf32>
    %14 = arith.addf %10, %13 : vector<16x128xf32>
    %15 = arith.truncf %14 : vector<16x128xf32> to vector<16x128xbf16>
    %c0_12 = arith.constant 0 : index
    %c0_13 = arith.constant 0 : index
    %16 = vector.load %arg6[%c0_12, %c0_13] : memref<16x128xbf16, #tpu.memory_space<vmem>>, vector<16x128xbf16>
    tpu.vector_store %arg6[%c0_12, %c0_13], %15 {strides = array<i32>} : memref<16x128xbf16, #tpu.memory_space<vmem>>, vector<16x128xbf16>,
    return
  }
  func.func @transform_0(%arg0: i32, %arg1: i32) -> (i32, i32) {
    %c0_i32 = arith.constant 0 : i32
    %c0_i32_0 = arith.constant 0 : i32
    return %arg1, %c0_i32 : i32, i32
  }
  func.func @transform_1(%arg0: i32, %arg1: i32) -> (i32, i32) {
    %c0_i32 = arith.constant 0 : i32
    %c0_i32_0 = arith.constant 0 : i32
    return %c0_i32, %arg0 : i32, i32
  }
  func.func @transform_2(%arg0: i32, %arg1: i32) -> (i32, i32) {
    %c0_i32 = arith.constant 0 : i32
    %c0_i32_0 = arith.constant 0 : i32
    return %c0_i32, %arg0 : i32, i32
  }
  func.func @transform_3(%arg0: i32, %arg1: i32) -> (i32, i32) {
    %c0_i32 = arith.constant 0 : i32
    %c0_i32_0 = arith.constant 0 : i32
    return %c0_i32, %arg0 : i32, i32
  }
  func.func @transform_4(%arg0: i32, %arg1: i32) -> (i32, i32) {
    %c0_i32 = arith.constant 0 : i32
    return %arg1, %arg0 : i32, i32
  }
}

</mosaic_0001>

<bundles_post_ra>
// kernel: tpu_custom_call.1
= control target key start
LH: loop header
LB: loop body
LE: loop exit
PB: predicated region body
PF: predicated region fallthrough
CT: control target
= control target key end

     0   :  { %9 = vsyncpa [#allocation3], 0  ;;  %s481_s0 = inlined_call_operand.hbm [shape: bf16[16,64], index: 0, kind: input, shape index: {}]   ;;  %s482_s1 = inlined_call_operand.hbm [shape: bf16[64,128], index: 1, kind: input, shape index: {}]   ;;  %s483_s2 = inlined_call_operand.hbm [shape: bf16[64,128], index: 2, kind: input, shape index: {}]   ;;  %s484_s3 = inlined_call_operand.vmem [shape: f32[2,128], index: 3, kind: input, shape index: {}]   ;;  %s485_s4 = inlined_call_operand.hbm [shape: bf16[16,128], index: 4, kind: output, shape index: {}]  }
   0x1   :  { %10 = vsyncpa [#allocation6], 0 }
   0x2   :  { %11 = vsyncpa [#allocation4], 0  ;;  %s418_s15 = smov [#allocation5]   ;;  %s419_s17 = smov [#allocation2]  }
   0x3   :  { %s29_s16 = sshll.u32 %s418_s15, 4  ;;  %s17_s18 = sshll.u32 %s419_s17, 4  ;;  %s30_s16 = int_to_ptr.vmem [resolvable:$true] %s29_s16  ;;  %s18_s18 = int_to_ptr.vmem [resolvable:$true] %s17_s18 }
   0x4   :  { %s340_s19 = scalar_lea.vmem %s30_s16, 512  ;;  %p345_p1 = scmp.lt.s32.totalorder %s30_s16, %s30_s16 }
   0x5   :  { %p341_p0 = scmp.ne.s32.totalorder %s30_s16, %s340_s19  ;;  %p346_p2 = scmp.lt.s32.totalorder %s340_s19, %s340_s19 }
   0x7   :  { %p347_p3 = por %p346_p2, %p345_p1 }
   0x9   :  { %p348_p4 = pnand %p347_p3, %p341_p0 }
   0xb   :  { %351 = shalt.err (!%p348_p4)
}
   0xc   :  { %s420_s20 = smov 64   ;;  %s421_s21 = smov 4  }
   0xd   :  { %35 = dma.hbm_to_vmem [thread:$0]  %s482_s1, 512, %s30_s16, [#allocation6], %s420_s20, %s420_s20, %s421_s21  }
   0xe   :  { %s360_s24 = scalar_lea.vmem %s18_s18, 128  ;;  %p365_p6 = scmp.lt.s32.totalorder %s18_s18, %s18_s18 }
   0xf   :  { %p361_p5 = scmp.ne.s32.totalorder %s18_s18, %s360_s24  ;;  %p366_p7 = scmp.lt.s32.totalorder %s360_s24, %s360_s24 }
  0x11   :  { %p367_p8 = por %p366_p7, %p365_p6 }
  0x13   :  { %p368_p9 = pnand %p367_p8, %p361_p5 }
  0x15   :  { %371 = shalt.err (!%p368_p9)
}
  0x16   :  { %23 = dma.hbm_to_vmem [thread:$0]  %s481_s0, 128, %s18_s18, [#allocation3], %s420_s20, %s420_s20, %s421_s21  }
  0x17   :  { %s422_s27 = smov [#allocation7]  }
  0x18   :  { %s41_s28 = sshll.u32 %s422_s27, 4  ;;  %s42_s28 = int_to_ptr.vmem [resolvable:$true] %s41_s28 }
  0x19   :  { %s380_s29 = scalar_lea.vmem %s42_s28, 512  ;;  %p385_p11 = scmp.lt.s32.totalorder %s42_s28, %s42_s28 }
  0x1a   :  { %p381_p10 = scmp.ne.s32.totalorder %s42_s28, %s380_s29  ;;  %p386_p12 = scmp.lt.s32.totalorder %s380_s29, %s380_s29 }
  0x1c   :  { %p387_p13 = por %p386_p12, %p385_p11 }
  0x1e   :  { %p388_p0 = pnand %p387_p13, %p381_p10 }
  0x20   :  { %391 = shalt.err (!%p388_p0)
}
  0x21   :  { %47 = dma.hbm_to_vmem [thread:$0]  %s483_s2, 512, %s42_s28, [#allocation6], %s420_s20, %s420_s20, %s421_s21  }
  0x22   :  { %412 = dma.done.wait [#allocation3], 128  }
  0x23   :  { %413 = vsyncadd [#allocation3], 4294967168 }
  0x24   :  { %414 = dma.done.wait [#allocation6], 1024  }
  0x25   :  { %415 = vsyncadd [#allocation6], 4294966272  ;;  %v423_v0 = vmov 0.0   ;;  %vm424_vm0 = vmmov 0   ;;  %v323_v1 = vld [vmem:[#allocation5 + $0x18] sm:$0xff]   ;;  %v325_v3 = vld [vmem:[#allocation5 + $0x10] sm:$0xff]  }
  0x26   :  { %291 = vmatprep.subr.bf16.mxu0 %v423_v0  ;;  %303 = vmatprep.subr.bf16.mxu1 %v423_v0  ;;  %v324_v2 = vld [vmem:[#allocation7 + $0x18] sm:$0xff]   ;;  %v326_v4 = vld [vmem:[#allocation7 + $0x10] sm:$0xff]   ;;  %v327_v5 = vld [vmem:[#allocation5 + $0x8] sm:$0xff]   ;;  %vm112_vm1 = vcmask 523264   ;;  %s425_s7 = smov [#allocation8]  }
  0x27   :  { %299 = vmatprep.mubr.msk.bf16.mxu0 %vm424_vm0, %v423_v0  ;;  %311 = vmatprep.mubr.msk.bf16.mxu1 %vm424_vm0, %v423_v0  ;;  %v328_v6 = vld [vmem:[#allocation7 + $0x8] sm:$0xff]   ;;  %v329_v7 = vld [vmem:[#allocation5] sm:$0xff]   ;;  %v331_v9 = vld [vmem:[#allocation2] sm:$0xff]   ;;  %s246_s8 = sshll.u32 %s425_s7, 4  ;;  %s247_s8 = int_to_ptr.vmem [resolvable:$true] %s246_s8 }
  0x28   :  { %292 = vmatpush3.bf16.msra.mxu0 %v323_v1  ;;  %304 = vmatpush3.bf16.msra.mxu1 %v324_v2  ;;  %v330_v8 = vld [vmem:[#allocation7] sm:$0xff]   ;;  %v259_v10 = vld [vmem:[%s484_s3] ss:$0 sm:$0xff]  ;;  %v266_v14 = vld [vmem:[%s484_s3 + $0x1] ss:$0 sm:$0xff]  ;;  %s392_s9 = scalar_lea.vmem %s247_s8, 128  ;;  %p397_p2 = scmp.lt.s32.totalorder %s247_s8, %s247_s8 }
  0x29   :  { %293 = vmatprep.subr.bf16.mxu0 %v423_v0  ;;  %305 = vmatprep.subr.bf16.mxu1 %v423_v0  ;;  %p393_p1 = scmp.ne.s32.totalorder %s247_s8, %s392_s9  ;;  %p398_p3 = scmp.lt.s32.totalorder %s392_s9, %s392_s9 }
  0x2b   :  { %p399_p4 = por %p398_p3, %p397_p2 }
  0x2c   :  { %294 = vmatpush3.bf16.msra.mxu0 %v325_v3  ;;  %306 = vmatpush3.bf16.msra.mxu1 %v326_v4 }
  0x2d   :  { %295 = vmatprep.subr.bf16.mxu0 %v423_v0  ;;  %307 = vmatprep.subr.bf16.mxu1 %v423_v0  ;;  %p400_p5 = pnand %p399_p4, %p393_p1 }
  0x30   :  { %296 = vmatpush3.bf16.msra.mxu0 %v327_v5  ;;  %308 = vmatpush3.bf16.msra.mxu1 %v328_v6 }
  0x31   :  { %297 = vmatprep.subr.bf16.mxu0 %v423_v0  ;;  %309 = vmatprep.subr.bf16.mxu1 %v423_v0 }
  0x34   :  { %298 = vmatpush3.bf16.msra.mxu0 %v329_v7  ;;  %310 = vmatpush3.bf16.msra.mxu1 %v330_v8 }
  0x37   :  { %300 = vmatmul.mubr.msk.bf16.vlgmr.msra.gmra.mxu0 %vm112_vm1, %v331_v9  ;;  %312 = vmatmul.mubr.msk.bf16.vlgmr.msra.gmra.mxu1 %vm112_vm1, %v331_v9 }
  0xf7   :  { %v150_v11 = vpop.f32.mrf.mxu0  ;;  %v222_v13 = vpop.f32.mrf.mxu1 }
  0xf8   :  { %v151_v12 = vadd.f32 %v259_v10, %v150_v11  ;;  %v223_v19 = vadd.f32 %v266_v14, %v222_v13 }
  0xf9   :  { %v301_v15 = vpop.f32.mrf.mxu0  ;;  %v313_v16 = vpop.f32.mrf.mxu1 }
  0xfa   :  { %v157_v18 = vmax.f32 %v151_v12, 0.0 }
  0xfb   :  { %v153_v17 = vpop.f32.mrf.mxu0  ;;  %v225_v21 = vpop.f32.mrf.mxu1 }
  0xfc   :  { %v154_v20 = vadd.f32 %v259_v10, %v153_v17  ;;  %v226_v24 = vadd.f32 %v266_v14, %v225_v21  ;;  %v229_v26 = vadd.f32 %v223_v19, %v157_v18 }
  0xfd   :  { %v302_v22 = vpop.f32.mrf.mxu0  ;;  %v314_v25 = vpop.f32.mrf.mxu1 }
  0xfe   :  { %v158_v23 = vmax.f32 %v154_v20, 0.0 }
 0x100   :  { %v230_v27 = vadd.f32 %v226_v24, %v158_v23 }
 0x102   :  { %v279_v28 = vpack.c.bf16 %v230_v27, %v229_v26 }
 0x104   :  { %280 = vst [vmem:[#allocation8] sm:$0xff] %v279_v28  }
 0x105   :  { %403 = shalt.err (!%p400_p5)
}
 0x106   :  { %252 = dma.vmem_to_hbm [thread:$0]  %s247_s8, 128, %s485_s4, [#allocation4], %s420_s20, %s420_s20, %s421_s21  }
 0x107   :  { %416 = dma.done.wait [#allocation4], 128  }
 0x108   :  { %417 = vsyncadd [#allocation4], 4294967168 }
 0x109   :  { %256 = vsyncpa [#allocation3], 1 }
 0x10a   :  { %257 = vsyncpa [#allocation6], 1 }
 0x10b   :  { %258 = vsyncpa [#allocation4], 1 }

</bundles_post_ra>
